<compile_context>
chip_gen: v5e
topology: v5e:2x2
jax: 0.10.0
libtpu: 0.0.40
codegen_flags: <defaults>
</compile_context>

<pallas_src>
import math
import numpy as np
import jax
import jax.numpy as jnp
from jax import lax
from jax.experimental import pallas as pl
from jax.experimental.pallas import tpu as pltpu


# --------------------------------------------------------------------------
# helpers
# --------------------------------------------------------------------------
def _round_up(n, m):
    return ((n + m - 1) // m) * m


def _pad2(a, bp, hp):
    b, h = a.shape
    return jnp.pad(a.astype(jnp.float32), ((0, bp - b), (0, hp - h)))


def _pad3(a, tp, bp, hp):
    t, b, h = a.shape
    return jnp.pad(a.astype(jnp.float32), ((0, tp - t), (0, bp - b), (0, hp - h)))


# --------------------------------------------------------------------------
# Shared math (used by the kernels, the hoisted XLA precompute and the JAX
# references, so the reference reproduces the kernel's bf16-matmul / f32
# accumulation path exactly).
# --------------------------------------------------------------------------
def _input_gates(x, w_ih, b_x):
    """x @ W_ih + b  (bf16 MXU matmul, f32 accumulation)."""
    return jnp.dot(x.astype(w_ih.dtype), w_ih,
                   preferred_element_type=jnp.float32) + b_x


def _gru_step(gx, h, w_hh, b_hh_n):
    """One GRU step. gx: input-side pre-activations (r/z biases already include
    b_hh; n block has b_ih only). h: f32. Gate order (r, z, n)."""
    hp = h.shape[-1]
    gh = jnp.dot(h.astype(w_hh.dtype), w_hh, preferred_element_type=jnp.float32)
    r = jax.nn.sigmoid(gx[:, 0 * hp:1 * hp] + gh[:, 0 * hp:1 * hp])
    z = jax.nn.sigmoid(gx[:, 1 * hp:2 * hp] + gh[:, 1 * hp:2 * hp])
    n = jnp.tanh(gx[:, 2 * hp:3 * hp] + r * (gh[:, 2 * hp:3 * hp] + b_hh_n))
    return (1.0 - z) * n + z * h


def _lstm_step(gx, h, c, w_hh):
    """One LSTM step. gx already contains b_ih + b_hh. Gate order (i, f, g, o)."""
    hp = h.shape[-1]
    gates = gx + jnp.dot(h.astype(w_hh.dtype), w_hh,
                         preferred_element_type=jnp.float32)
    i = jax.nn.sigmoid(gates[:, 0 * hp:1 * hp])
    f = jax.nn.sigmoid(gates[:, 1 * hp:2 * hp])
    g = jnp.tanh(gates[:, 2 * hp:3 * hp])
    o = jax.nn.sigmoid(gates[:, 3 * hp:4 * hp])
    c_new = f * c + i * g
    h_new = o * jnp.tanh(c_new)
    return h_new, c_new


# --------------------------------------------------------------------------
# single-step kernels (module forward semantics; fully fused, no concat)
# --------------------------------------------------------------------------
def _gru_cell_kernel(x_ref, h_ref, wih_ref, whh_ref, bx_ref, bhhn_ref, o_ref):
    gx = _input_gates(x_ref[...], wih_ref[...], bx_ref[...])
    h_new = _gru_step(gx, h_ref[...].astype(jnp.float32),
                      whh_ref[...], bhhn_ref[...])
    o_ref[...] = h_new.astype(o_ref.dtype)


def _lstm_cell_kernel(x_ref, h_ref, c_ref, wih_ref, whh_ref, b_ref,
                      ho_ref, co_ref):
    gx = _input_gates(x_ref[...], wih_ref[...], b_ref[...])
    h_new, c_new = _lstm_step(gx, h_ref[...].astype(jnp.float32),
                              c_ref[...].astype(jnp.float32), whh_ref[...])
    ho_ref[...] = h_new.astype(ho_ref.dtype)
    co_ref[...] = c_new.astype(co_ref.dtype)


# --------------------------------------------------------------------------
# weight-resident sequence kernels
#   grid = (batch_blocks["parallel"], time_blocks["arbitrary"])
#   Each grid step processes TB unrolled timesteps on the resident h/c scratch.
#   Only h @ W_hh runs inside the loop (x-side matmul is hoisted to XLA).
# --------------------------------------------------------------------------
def _gru_seq_kernel(gx_ref, h0_ref, whh_ref, bhhn_ref, hs_ref, h_scr):
    t_blk = pl.program_id(1)

    @pl.when(t_blk == 0)
    def _():
        h_scr[...] = h0_ref[...].astype(jnp.float32)

    def step(i, carry):
        h_new = _gru_step(gx_ref[i].astype(jnp.float32), h_scr[...],
                          whh_ref[...], bhhn_ref[...])
        h_scr[...] = h_new
        hs_ref[i] = h_new.astype(hs_ref.dtype)
        return carry

    # Padded trailing timesteps (if any) only corrupt h_scr AFTER the last
    # valid step; every valid hs row is already written, so no masking needed.
    lax.fori_loop(0, gx_ref.shape[0], step, 0, unroll=True)


def _make_lstm_seq_kernel(t_valid, t_block, need_mask):
    def kernel(gx_ref, h0_ref, c0_ref, whh_ref, hs_ref, c_out_ref, h_scr, c_scr):
        t_blk = pl.program_id(1)

        @pl.when(t_blk == 0)
        def _():
            h_scr[...] = h0_ref[...].astype(jnp.float32)
            c_scr[...] = c0_ref[...].astype(jnp.float32)

        def step(i, carry):
            h_new, c_new = _lstm_step(gx_ref[i].astype(jnp.float32),
                                      h_scr[...], c_scr[...], whh_ref[...])
            if need_mask:  # T was padded up to a multiple of t_block
                valid = (t_blk * t_block + i) < t_valid
                h_new = jnp.where(valid, h_new, h_scr[...])
                c_new = jnp.where(valid, c_new, c_scr[...])
            h_scr[...] = h_new
            c_scr[...] = c_new
            hs_ref[i] = h_new.astype(hs_ref.dtype)
            return carry

        lax.fori_loop(0, t_block, step, 0, unroll=True)

        @pl.when(t_blk == pl.num_programs(1) - 1)
        def _():
            c_out_ref[...] = c_scr[...].astype(c_out_ref.dtype)

    return kernel


_VMEM_SPEC = pl.BlockSpec(memory_space=pltpu.MemorySpace.VMEM)


# --------------------------------------------------------------------------
# Python wrapper
# --------------------------------------------------------------------------
class RNNCellWrapperPallas:
    """JAX/Pallas port of RNNCellWrapper (forward pass only).

    NOTE: every single-step __call__ re-DMAs the full weight set HBM->VMEM;
    for repeated stepping use run_sequence(), which keeps W_hh resident in
    VMEM across the whole sequence and hoists the x-side matmul out of the
    serial loop.
    """

    def __init__(self, module_name, hidden_dim, key, param_dtype=jnp.bfloat16):
        assert module_name in ['gru', 'lstm', 'lstmLN']
        self.module_name = module_name
        self.hidden_dim = hidden_dim
        if module_name == 'lstmLN':
            # TODO(synk): torch.nn.LayerNormLSTMCell does not exist in stock
            # PyTorch, so its exact semantics are undefined; not implemented.
            raise NotImplementedError("lstmLN has no reference PyTorch semantics")

        n_gates = 3 if module_name == 'gru' else 4
        self.n_gates = n_gates
        H = hidden_dim
        Hp = _round_up(H, 128)          # lane-aligned hidden dim
        self.Hp = Hp

        stdv = 1.0 / math.sqrt(H)
        k1, k2, k3, k4 = jax.random.split(key, 4)
        wih = np.asarray(jax.random.uniform(k1, (H, n_gates * H), jnp.float32, -stdv, stdv))
        whh = np.asarray(jax.random.uniform(k2, (H, n_gates * H), jnp.float32, -stdv, stdv))
        bih = np.asarray(jax.random.uniform(k3, (n_gates * H,), jnp.float32, -stdv, stdv))
        bhh = np.asarray(jax.random.uniform(k4, (n_gates * H,), jnp.float32, -stdv, stdv))

        # Lane-padded, transposed layouts: each gate owns its own 128-aligned
        # column block [g*Hp, g*Hp + H); padded rows/cols are zero, which keeps
        # the padded hidden lanes identically zero across steps.
        wih_p = np.zeros((Hp, n_gates * Hp), np.float32)
        whh_p = np.zeros((Hp, n_gates * Hp), np.float32)
        b_x = np.zeros((1, n_gates * Hp), np.float32)
        for g in range(n_gates):
            wih_p[:H, g * Hp:g * Hp + H] = wih[:, g * H:(g + 1) * H]
            whh_p[:H, g * Hp:g * Hp + H] = whh[:, g * H:(g + 1) * H]

        if module_name == 'gru':
            # r, z gates: b_ih + b_hh folded into the hoisted input gates; the
            # n gate keeps b_hh separate (it sits inside the r * (.) term).
            b_x[0, 0 * Hp:0 * Hp + H] = bih[0 * H:1 * H] + bhh[0 * H:1 * H]
            b_x[0, 1 * Hp:1 * Hp + H] = bih[1 * H:2 * H] + bhh[1 * H:2 * H]
            b_x[0, 2 * Hp:2 * Hp + H] = bih[2 * H:3 * H]
            b_hh_n = np.zeros((1, Hp), np.float32)
            b_hh_n[0, :H] = bhh[2 * H:3 * H]
            self.b_hh_n = jnp.asarray(b_hh_n)          # f32
        else:
            for g in range(n_gates):
                b_x[0, g * Hp:g * Hp + H] = (bih[g * H:(g + 1) * H]
                                             + bhh[g * H:(g + 1) * H])

        self.w_ih = jnp.asarray(wih_p, param_dtype)
        self.w_hh = jnp.asarray(whh_p, param_dtype)
        self.b_x = jnp.asarray(b_x)                    # f32

    # -------- hoisted x-side matmul (one big MXU matmul, done by XLA) --------
    def input_gates(self, x_p):
        """x_p: (..., Hp) f32 -> (..., nG*Hp) f32 gate pre-activations."""
        flat = x_p.reshape(-1, self.Hp)
        gx = _input_gates(flat, self.w_ih, self.b_x)
        return gx.reshape(x_p.shape[:-1] + (self.n_gates * self.Hp,))

    # ---------------- single step (module forward semantics) ----------------
    def __call__(self, x, h):
        B, H = x.shape
        assert H == self.hidden_dim
        Bp, Hp = _round_up(B, 16), self.Hp   # 16 = bf16 MXU-LHS native sublane tile
        xp = _pad2(x, Bp, Hp)

        if self.module_name == 'gru':
            hp_ = _pad2(h, Bp, Hp)
            out = pl.pallas_call(
                _gru_cell_kernel,
                out_shape=jax.ShapeDtypeStruct((Bp, Hp), jnp.float32),
                in_specs=[_VMEM_SPEC] * 6,
                out_specs=_VMEM_SPEC,
            )(xp, hp_, self.w_ih, self.w_hh, self.b_x, self.b_hh_n)
            return out[:B, :H].astype(x.dtype)

        h0, c0 = h
        h0p = _pad2(h0, Bp, Hp)
        c0p = _pad2(c0, Bp, Hp)
        h_new, c_new = pl.pallas_call(
            _lstm_cell_kernel,
            out_shape=(jax.ShapeDtypeStruct((Bp, Hp), jnp.float32),
                       jax.ShapeDtypeStruct((Bp, Hp), jnp.float32)),
            in_specs=[_VMEM_SPEC] * 6,
            out_specs=(_VMEM_SPEC, _VMEM_SPEC),
        )(xp, h0p, c0p, self.w_ih, self.w_hh, self.b_x)
        return h_new[:B, :H].astype(x.dtype), c_new[:B, :H].astype(x.dtype)

    # ---------------- weight-resident multi-step sequence ----------------
    def run_sequence(self, xs, h, *, time_block=8):
        """xs: (T, B, H). Returns hs (T, B, H) [GRU] or (hs, (h_T, c_T)) [LSTM]."""
        T, B, H = xs.shape
        assert H == self.hidden_dim
        Hp, nG = self.Hp, self.n_gates
        Bp = _round_up(B, 16)
        # v7x megacore: split the batch into 2 "parallel" blocks when large.
        BB = Bp // 2 if (Bp >= 64 and Bp % 32 == 0) else Bp
        nB = Bp // BB
        TB = min(time_block, T)
        nT = (T + TB - 1) // TB
        Tp = nT * TB
        out_dt = xs.dtype
        o_sz = jnp.dtype(out_dt).itemsize

        # Hoisted x-side matmul for all timesteps at once (M = Tp*Bp), then
        # stream bf16 pre-activations through the recurrence kernel.
        xs_p = _pad3(xs, Tp, Bp, Hp)
        gx = self.input_gates(xs_p).astype(jnp.bfloat16)      # (Tp, Bp, nG*Hp)

        # Resident-VMEM budget: single-buffered W_hh + double-buffered streams.
        need = (Hp * nG * Hp * 2 + nG * Hp * 4 + Hp * 4
                + 2 * TB * BB * nG * Hp * 2          # gx tiles
                + 2 * TB * BB * Hp * o_sz            # hs tiles
                + 6 * BB * Hp * 4)                   # h0/c0/c_out/scratch
        vmem_limit = int(min(max(need * 5 // 4 + (2 << 20), 32 << 20), 100 << 20))
        # TODO(synk): for very large H the bf16 W_hh no longer fits v7x's 64 MiB
        # VMEM even single-buffered; tile the gate-column axis as an extra inner
        # grid axis (stream weights) in that regime.

        cparams = pltpu.CompilerParams(
            dimension_semantics=("parallel", "arbitrary"),
            vmem_limit_bytes=vmem_limit)

        if self.module_name == 'gru':
            h0_p = _pad2(h, Bp, Hp)
            cost = pl.CostEstimate(
                flops=int(2 * Tp * Bp * Hp * nG * Hp),
                transcendentals=int(Tp * Bp * nG * Hp),
                bytes_accessed=int(Tp * Bp * nG * Hp * 2 + Tp * Bp * Hp * o_sz
                                   + Hp * nG * Hp * 2 + Bp * Hp * 4))
            hs = pl.pallas_call(
                _gru_seq_kernel,
                out_shape=jax.ShapeDtypeStruct((Tp, Bp, Hp), out_dt),
                grid_spec=pltpu.PrefetchScalarGridSpec(
                    num_scalar_prefetch=0,
                    grid=(nB, nT),
                    in_specs=[
                        pl.BlockSpec((TB, BB, nG * Hp), lambda b, t: (t, b, 0)),  # gx
                        pl.BlockSpec((BB, Hp), lambda b, t: (b, 0)),              # h0
                        pl.BlockSpec((Hp, nG * Hp), lambda b, t: (0, 0),
                                     pipeline_mode=pl.Buffered(1)),               # W_hh resident
                        pl.BlockSpec((1, Hp), lambda b, t: (0, 0),
                                     pipeline_mode=pl.Buffered(1)),               # b_hh (n gate)
                    ],
                    out_specs=pl.BlockSpec((TB, BB, Hp), lambda b, t: (t, b, 0)),
                    scratch_shapes=[pltpu.VMEM((BB, Hp), jnp.float32)],
                ),
                compiler_params=cparams,
                cost_estimate=cost,
            )(gx, h0_p, self.w_hh, self.b_hh_n)
            return hs[:T, :B, :H]

        h0, c0 = h
        h0_p = _pad2(h0, Bp, Hp)
        c0_p = _pad2(c0, Bp, Hp)
        cost = pl.CostEstimate(
            flops=int(2 * Tp * Bp * Hp * nG * Hp),
            transcendentals=int(Tp * Bp * (nG + 1) * Hp),
            bytes_accessed=int(Tp * Bp * nG * Hp * 2 + Tp * Bp * Hp * o_sz
                               + Hp * nG * Hp * 2 + 3 * Bp * Hp * 4))
        kernel = _make_lstm_seq_kernel(T, TB, need_mask=(Tp != T))
        hs, c_fin = pl.pallas_call(
            kernel,
            out_shape=(jax.ShapeDtypeStruct((Tp, Bp, Hp), out_dt),
                       jax.ShapeDtypeStruct((Bp, Hp), jnp.float32)),
            grid_spec=pltpu.PrefetchScalarGridSpec(
                num_scalar_prefetch=0,
                grid=(nB, nT),
                in_specs=[
                    pl.BlockSpec((TB, BB, nG * Hp), lambda b, t: (t, b, 0)),      # gx
                    pl.BlockSpec((BB, Hp), lambda b, t: (b, 0)),                  # h0
                    pl.BlockSpec((BB, Hp), lambda b, t: (b, 0)),                  # c0
                    pl.BlockSpec((Hp, nG * Hp), lambda b, t: (0, 0),
                                 pipeline_mode=pl.Buffered(1)),                   # W_hh resident
                ],
                out_specs=(pl.BlockSpec((TB, BB, Hp), lambda b, t: (t, b, 0)),
                           pl.BlockSpec((BB, Hp), lambda b, t: (b, 0))),
                scratch_shapes=[pltpu.VMEM((BB, Hp), jnp.float32),
                                pltpu.VMEM((BB, Hp), jnp.float32)],
            ),
            compiler_params=cparams,
            cost_estimate=cost,
        )(gx, h0_p, c0_p, self.w_hh)
        hs = hs[:T, :B, :H]
        return hs, (hs[-1], c_fin[:B, :H].astype(out_dt))


# --------------------------------------------------------------------------
if __name__ == "__main__":
    B, H, T = 8, 32, 10   # T=10 with TB=8 also exercises the padded-tail path
    key = jax.random.PRNGKey(0)
    k_x, k_xs, k_h, k_c, k_gru, k_lstm = jax.random.split(key, 6)

    x = jax.random.normal(k_x, (B, H), jnp.float32)
    xs = jax.random.normal(k_xs, (T, B, H), jnp.float32)
    h0 = jax.random.normal(k_h, (B, H), jnp.float32)
    c0 = jax.random.normal(k_c, (B, H), jnp.float32)

    TOL = dict(atol=2e-3, rtol=2e-3)

    # ---------------- GRU ----------------
    gru = RNNCellWrapperPallas('gru', H, k_gru)
    Bp, Hp = _round_up(B, 16), gru.Hp

    # single step
    h1 = jax.block_until_ready(gru(x, h0))
    gx1 = gru.input_gates(_pad2(x, Bp, Hp))
    h1_ref = _gru_step(gx1, _pad2(h0, Bp, Hp), gru.w_hh, gru.b_hh_n)[:B, :H]
    assert np.allclose(np.asarray(h1), np.asarray(h1_ref), **TOL)

    # sequence (weight-resident, hoisted x-matmul, unrolled time blocks)
    hs = jax.block_until_ready(gru.run_sequence(xs, h0))
    gx_all = gru.input_gates(_pad3(xs, T, Bp, Hp)).astype(jnp.bfloat16)
    h_ref = _pad2(h0, Bp, Hp)
    hs_ref = []
    for t in range(T):
        h_ref = _gru_step(gx_all[t].astype(jnp.float32), h_ref, gru.w_hh, gru.b_hh_n)
        hs_ref.append(h_ref[:B, :H])
    hs_ref = jnp.stack(hs_ref)
    assert np.allclose(np.asarray(hs), np.asarray(hs_ref), **TOL)

    # ---------------- LSTM ----------------
    lstm = RNNCellWrapperPallas('lstm', H, k_lstm)

    # single step
    h1, c1 = jax.block_until_ready(lstm(x, (h0, c0)))
    gx1 = lstm.input_gates(_pad2(x, Bp, Hp))
    h1_ref, c1_ref = _lstm_step(gx1, _pad2(h0, Bp, Hp), _pad2(c0, Bp, Hp), lstm.w_hh)
    assert np.allclose(np.asarray(h1), np.asarray(h1_ref[:B, :H]), **TOL)
    assert np.allclose(np.asarray(c1), np.asarray(c1_ref[:B, :H]), **TOL)

    # sequence
    hs, (h_fin, c_fin) = jax.block_until_ready(lstm.run_sequence(xs, (h0, c0)))
    gx_all = lstm.input_gates(_pad3(xs, T, Bp, Hp)).astype(jnp.bfloat16)
    h_ref, c_ref = _pad2(h0, Bp, Hp), _pad2(c0, Bp, Hp)
    hs_ref = []
    for t in range(T):
        h_ref, c_ref = _lstm_step(gx_all[t].astype(jnp.float32), h_ref, c_ref, lstm.w_hh)
        hs_ref.append(h_ref[:B, :H])
    hs_ref = jnp.stack(hs_ref)
    assert np.allclose(np.asarray(hs), np.asarray(hs_ref), **TOL)
    assert np.allclose(np.asarray(h_fin), np.asarray(hs_ref[-1]), **TOL)
    assert np.allclose(np.asarray(c_fin), np.asarray(c_ref[:B, :H]), **TOL)

    print("KERNEL_OK")
</pallas_src>

<mosaic_0001>
module attributes {stable_mosaic.version = 11 : i64} {
  func.func @_gru_cell_kernel(%arg0: memref<16x128xf32, #tpu.memory_space<vmem>>, %arg1: memref<16x128xf32, #tpu.memory_space<vmem>>, %arg2: memref<128x384xbf16, #tpu.memory_space<vmem>>, %arg3: memref<128x384xbf16, #tpu.memory_space<vmem>>, %arg4: memref<1x384xf32, #tpu.memory_space<vmem>>, %arg5: memref<1x128xf32, #tpu.memory_space<vmem>>, %arg6: memref<16x128xf32, #tpu.memory_space<vmem>>) attributes {dimension_semantics = [], scalar_prefetch = 0 : i64, scratch_operands = 0 : i64, tpu.core_type = #tpu.core_type<tc>} {
    %c0 = arith.constant 0 : index
    %c0_0 = arith.constant 0 : index
    %0 = vector.load %arg0[%c0, %c0_0] : memref<16x128xf32, #tpu.memory_space<vmem>>, vector<16x128xf32>
    %c0_1 = arith.constant 0 : index
    %c0_2 = arith.constant 0 : index
    %1 = vector.load %arg2[%c0_1, %c0_2] : memref<128x384xbf16, #tpu.memory_space<vmem>>, vector<128x384xbf16>
    %c0_3 = arith.constant 0 : index
    %c0_4 = arith.constant 0 : index
    %2 = vector.load %arg4[%c0_3, %c0_4] : memref<1x384xf32, #tpu.memory_space<vmem>>, vector<1x384xf32>
    %3 = arith.truncf %0 : vector<16x128xf32> to vector<16x128xbf16>
    %cst = arith.constant dense<0.000000e+00> : vector<16x384xf32>
    %4 = tpu.matmul %3, %1, %cst {dimension_numbers = #tpu.dot_dimension_numbers<[1], [0], [0], [1], [0, 0, 1, 1], [], []>} : vector<16x128xbf16>, vector<128x384xbf16>, vector<16x384xf32> -> vector<16x384xf32>
    %5 = vector.broadcast %2 : vector<1x384xf32> to vector<16x384xf32>
    %6 = arith.addf %4, %5 : vector<16x384xf32>
    %c0_5 = arith.constant 0 : index
    %c0_6 = arith.constant 0 : index
    %7 = vector.load %arg1[%c0_5, %c0_6] : memref<16x128xf32, #tpu.memory_space<vmem>>, vector<16x128xf32>
    %c0_7 = arith.constant 0 : index
    %c0_8 = arith.constant 0 : index
    %8 = vector.load %arg3[%c0_7, %c0_8] : memref<128x384xbf16, #tpu.memory_space<vmem>>, vector<128x384xbf16>
    %c0_9 = arith.constant 0 : index
    %c0_10 = arith.constant 0 : index
    %9 = vector.load %arg5[%c0_9, %c0_10] : memref<1x128xf32, #tpu.memory_space<vmem>>, vector<1x128xf32>
    %10 = arith.truncf %7 : vector<16x128xf32> to vector<16x128xbf16>
    %cst_11 = arith.constant dense<0.000000e+00> : vector<16x384xf32>
    %11 = tpu.matmul %10, %8, %cst_11 {dimension_numbers = #tpu.dot_dimension_numbers<[1], [0], [0], [1], [0, 0, 1, 1], [], []>} : vector<16x128xbf16>, vector<128x384xbf16>, vector<16x384xf32> -> vector<16x384xf32>
    %12 = vector.extract_strided_slice %6 {offsets = [0, 0], sizes = [16, 128], strides = [1, 1]} : vector<16x384xf32> to vector<16x128xf32>
    %13 = vector.extract_strided_slice %11 {offsets = [0, 0], sizes = [16, 128], strides = [1, 1]} : vector<16x384xf32> to vector<16x128xf32>
    %14 = arith.addf %12, %13 : vector<16x128xf32>
    %15 = arith.negf %14 : vector<16x128xf32>
    %16 = math.exp %15 : vector<16x128xf32>
    %cst_12 = arith.constant 1.000000e+00 : f32
    %17 = vector.broadcast %cst_12 : f32 to vector<16x128xf32>
    %18 = arith.addf %17, %16 : vector<16x128xf32>
    %19 = arith.divf %17, %18 : vector<16x128xf32>
    %20 = vector.extract_strided_slice %6 {offsets = [0, 128], sizes = [16, 128], strides = [1, 1]} : vector<16x384xf32> to vector<16x128xf32>
    %21 = vector.extract_strided_slice %11 {offsets = [0, 128], sizes = [16, 128], strides = [1, 1]} : vector<16x384xf32> to vector<16x128xf32>
    %22 = arith.addf %20, %21 : vector<16x128xf32>
    %23 = arith.negf %22 : vector<16x128xf32>
    %24 = math.exp %23 : vector<16x128xf32>
    %cst_13 = arith.constant 1.000000e+00 : f32
    %25 = vector.broadcast %cst_13 : f32 to vector<16x128xf32>
    %26 = arith.addf %25, %24 : vector<16x128xf32>
    %27 = arith.divf %25, %26 : vector<16x128xf32>
    %28 = vector.extract_strided_slice %6 {offsets = [0, 256], sizes = [16, 128], strides = [1, 1]} : vector<16x384xf32> to vector<16x128xf32>
    %29 = vector.extract_strided_slice %11 {offsets = [0, 256], sizes = [16, 128], strides = [1, 1]} : vector<16x384xf32> to vector<16x128xf32>
    %30 = vector.broadcast %9 : vector<1x128xf32> to vector<16x128xf32>
    %31 = arith.addf %29, %30 : vector<16x128xf32>
    %32 = arith.mulf %19, %31 : vector<16x128xf32>
    %33 = arith.addf %28, %32 : vector<16x128xf32>
    %34 = math.tanh %33 : vector<16x128xf32>
    %cst_14 = arith.constant 1.000000e+00 : f32
    %35 = vector.broadcast %cst_14 : f32 to vector<16x128xf32>
    %36 = arith.subf %35, %27 : vector<16x128xf32>
    %37 = arith.mulf %36, %34 : vector<16x128xf32>
    %38 = arith.mulf %27, %7 : vector<16x128xf32>
    %39 = arith.addf %37, %38 : vector<16x128xf32>
    %c0_15 = arith.constant 0 : index
    %c0_16 = arith.constant 0 : index
    %40 = vector.load %arg6[%c0_15, %c0_16] : memref<16x128xf32, #tpu.memory_space<vmem>>, vector<16x128xf32>
    tpu.vector_store %arg6[%c0_15, %c0_16], %39 {strides = array<i32>} : memref<16x128xf32, #tpu.memory_space<vmem>>, vector<16x128xf32>,
    return
  }
}

</mosaic_0001>

<bundles_post_ra>
// kernel: tpu_custom_call.1
= control target key start
LH: loop header
LB: loop body
LE: loop exit
PB: predicated region body
PF: predicated region fallthrough
CT: control target
= control target key end

     0   :  { %11 = vsyncpa [#allocation3], 0  ;;  %s1127_s0 = inlined_call_operand.hbm [shape: f32[16,128], index: 0, kind: input, shape index: {}]   ;;  %s1128_s1 = inlined_call_operand.hbm [shape: f32[16,128], index: 1, kind: input, shape index: {}]   ;;  %s1129_s2 = inlined_call_operand.hbm [shape: bf16[128,384], index: 2, kind: input, shape index: {}]   ;;  %s1130_s3 = inlined_call_operand.hbm [shape: bf16[128,384], index: 3, kind: input, shape index: {}]   ;;  %s1131_s4 = inlined_call_operand.vmem [shape: f32[1,384], index: 4, kind: input, shape index: {}]   ;;  %s1132_s5 = inlined_call_operand.vmem [shape: f32[1,128], index: 5, kind: input, shape index: {}]   ;;  %s1133_s6 = inlined_call_operand.hbm [shape: f32[16,128], index: 6, kind: output, shape index: {}]  }
   0x1   :  { %12 = vsyncpa [#allocation6], 0 }
   0x2   :  { %13 = vsyncpa [#allocation9], 0 }
   0x3   :  { %14 = vsyncpa [#allocation4], 0  ;;  %s32_s23 = sshll.u32 %s1128_s1, 4  ;;  %s1030_s24 = smov [#allocation5]   ;;  %s33_s23 = int_to_ptr.hbm [resolvable:$true] %s32_s23 }
   0x4   :  { %s34_s25 = sshll.u32 %s1030_s24, 4  ;;  %s19_s28 = sshll.u32 %s1127_s0, 4  ;;  %s35_s25 = int_to_ptr.vmem [resolvable:$true] %s34_s25  ;;  %s20_s28 = int_to_ptr.hbm [resolvable:$true] %s19_s28 }
   0x5   :  { %s1031_s29 = smov 128   ;;  %s1032_s30 = smov 8  }
   0x6   :  { %40 = dma.hbm_to_vmem [thread:$0]  %s33_s23, 256, %s35_s25, [#allocation6], %s1031_s29, %s1031_s29, %s1032_s30  }
   0x7   :  { %s1033_s7 = smov [#allocation2]   ;;  %s45_s1 = sshll.u32 %s1129_s2, 4  ;;  %s46_s1 = int_to_ptr.hbm [resolvable:$true] %s45_s1 }
   0x8   :  { %s21_s8 = sshll.u32 %s1033_s7, 4  ;;  %s1034_s0 = smov [#allocation7]   ;;  %s22_s8 = int_to_ptr.vmem [resolvable:$true] %s21_s8 }
   0x9   :  { %27 = dma.hbm_to_vmem [thread:$0]  %s20_s28, 256, %s22_s8, [#allocation3], %s1031_s29, %s1031_s29, %s1032_s30  }
   0xa   :  { %s47_s11 = sshll.u32 %s1034_s0, 4  ;;  %s58_s14 = sshll.u32 %s1130_s3, 4  ;;  %s48_s11 = int_to_ptr.vmem [resolvable:$true] %s47_s11  ;;  %s59_s14 = int_to_ptr.hbm [resolvable:$true] %s58_s14 }
   0xb   :  { %s1035_s15 = smov 192   ;;  %s1036_s16 = smov 12  }
   0xc   :  { %53 = dma.hbm_to_vmem [thread:$0]  %s46_s1, 3072, %s48_s11, [#allocation6], %s1035_s15, %s1035_s15, %s1036_s16  }
   0xd   :  { %s1037_s17 = smov [#allocation8]  }
   0xe   :  { %s60_s18 = sshll.u32 %s1037_s17, 4  ;;  %s61_s18 = int_to_ptr.vmem [resolvable:$true] %s60_s18 }
   0xf   :  { %66 = dma.hbm_to_vmem [thread:$0]  %s59_s14, 3072, %s61_s18, [#allocation9], %s1035_s15, %s1035_s15, %s1036_s16  }
  0x10   :  { %1022 = dma.done.wait [#allocation3], 256  }
  0x11   :  { %1023 = vsyncadd [#allocation3], 4294967040 }
  0x12   :  { %1024 = dma.done.wait [#allocation6], 3328  }
  0x13   :  { %1025 = vsyncadd [#allocation6], 4294963968 }
  0x14   :  { %1026 = dma.done.wait [#allocation9], 3072  }
  0x15   :  { %1027 = vsyncadd [#allocation9], 4294964224  ;;  %v714_v0 = vld [vmem:[#allocation7 + $0xa8] sm:$0xf]  ;;  %v846_v1 = vld [vmem:[#allocation7 + $0xb0] sm:$0xf0] }
  0x16   :  { %v810_v2 = vld [vmem:[#allocation8 + $0xa8] sm:$0xf]  ;;  %v715_v3 = vor.u32 %v846_v1, %v714_v0  ;;  %v870_v4 = vld [vmem:[#allocation8 + $0xb0] sm:$0xf0]  ;;  %v702_v5 = vld [vmem:[#allocation7 + $0x90] sm:$0xf] }
  0x17   :  { %v843_v6 = vld [vmem:[#allocation7 + $0x98] sm:$0xf0]  ;;  %v811_v7 = vor.u32 %v870_v4, %v810_v2  ;;  %v798_v8 = vld [vmem:[#allocation8 + $0x90] sm:$0xf]  ;;  %v845_v10 = vld [vmem:[#allocation7 + $0xac] sm:$0xf] }
  0x18   :  { %v867_v9 = vld [vmem:[#allocation8 + $0x98] sm:$0xf0]  ;;  %258 = vmatpush.bf16.msra.mxu0 %v715_v3  ;;  %v703_v11 = vor.u32 %v843_v6, %v702_v5  ;;  %v716_v12 = vld [vmem:[#allocation7 + $0xb4] sm:$0xf0]  ;;  %v840_v16 = vld [vmem:[#allocation7 + $0x80] sm:$0xf0] }
  0x19   :  { %464 = vmatpush.bf16.msra.mxu3 %v811_v7  ;;  %v799_v13 = vor.u32 %v867_v9, %v798_v8  ;;  %v719_v14 = vor.u32 %v845_v10, %v716_v12  ;;  %v690_v15 = vld [vmem:[#allocation7 + $0x78] sm:$0xf]  ;;  %v842_v17 = vld [vmem:[#allocation7 + $0x94] sm:$0xf]  ;;  %v864_v19 = vld [vmem:[#allocation8 + $0x80] sm:$0xf0] }
  0x1a   :  { %v786_v18 = vld [vmem:[#allocation8 + $0x78] sm:$0xf]  ;;  %v704_v20 = vld [vmem:[#allocation7 + $0x9c] sm:$0xf0]  ;;  %v691_v22 = vor.u32 %v840_v16, %v690_v15  ;;  %v839_v23 = vld [vmem:[#allocation7 + $0x7c] sm:$0xf] }
  0x1b   :  { %272 = vmatpush.bf16.msra.mxu1 %v719_v14  ;;  %v707_v21 = vor.u32 %v842_v17, %v704_v20  ;;  %v692_v24 = vld [vmem:[#allocation7 + $0x84] sm:$0xf0]  ;;  %v787_v25 = vor.u32 %v864_v19, %v786_v18  ;;  %v678_v26 = vld [vmem:[#allocation7 + $0x60] sm:$0xf]  ;;  %v837_v27 = vld [vmem:[#allocation7 + $0x68] sm:$0xf0] }
  0x1c   :  { %259 = vmatpush.bf16.msra.mxu0 %v703_v11  ;;  %v774_v28 = vld [vmem:[#allocation8 + $0x60] sm:$0xf]  ;;  %v861_v29 = vld [vmem:[#allocation8 + $0x68] sm:$0xf0]  ;;  %v695_v30 = vor.u32 %v839_v23, %v692_v24  ;;  %v679_v31 = vor.u32 %v837_v27, %v678_v26  ;;  %v836_v32 = vld [vmem:[#allocation7 + $0x64] sm:$0xf] }
  0x1d   :  { %465 = vmatpush.bf16.msra.mxu3 %v799_v13  ;;  %v680_v33 = vld [vmem:[#allocation7 + $0x6c] sm:$0xf0]  ;;  %v775_v34 = vor.u32 %v861_v29, %v774_v28  ;;  %v666_v35 = vld [vmem:[#allocation7 + $0x48] sm:$0xf]  ;;  %v834_v36 = vld [vmem:[#allocation7 + $0x50] sm:$0xf0] }
  0x1e   :  { %v762_v37 = vld [vmem:[#allocation8 + $0x48] sm:$0xf]  ;;  %v858_v38 = vld [vmem:[#allocation8 + $0x50] sm:$0xf0]  ;;  %v683_v39 = vor.u32 %v836_v32, %v680_v33  ;;  %v667_v40 = vor.u32 %v834_v36, %v666_v35  ;;  %v654_v41 = vld [vmem:[#allocation7 + $0x30] sm:$0xf] }
  0x1f   :  { %273 = vmatpush.bf16.msra.mxu1 %v707_v21  ;;  %v833_v42 = vld [vmem:[#allocation7 + $0x4c] sm:$0xf]  ;;  %v668_v43 = vld [vmem:[#allocation7 + $0x54] sm:$0xf0]  ;;  %v763_v44 = vor.u32 %v858_v38, %v762_v37  ;;  %v831_v45 = vld [vmem:[#allocation7 + $0x38] sm:$0xf0] }
  0x20   :  { %260 = vmatpush.bf16.msra.mxu0 %v691_v22  ;;  %v722_v46 = vld [vmem:[#allocation7 + $0xb0] sm:$0xf]  ;;  %v847_v47 = vld [vmem:[#allocation7 + $0xb8] sm:$0xf0]  ;;  %v671_v51 = vor.u32 %v833_v42, %v668_v43  ;;  %v710_v52 = vld [vmem:[#allocation7 + $0x98] sm:$0xf]  ;;  %v655_v53 = vor.u32 %v831_v45, %v654_v41 }
  0x21   :  { %466 = vmatpush.bf16.msra.mxu3 %v787_v25  ;;  %v750_v48 = vld [vmem:[#allocation8 + $0x30] sm:$0xf]  ;;  %v855_v49 = vld [vmem:[#allocation8 + $0x38] sm:$0xf0]  ;;  %v723_v50 = vor.u32 %v847_v47, %v722_v46  ;;  %v830_v54 = vld [vmem:[#allocation7 + $0x34] sm:$0xf] }
  0x22   :  { %v656_v55 = vld [vmem:[#allocation7 + $0x3c] sm:$0xf0]  ;;  %v844_v56 = vld [vmem:[#allocation7 + $0xa0] sm:$0xf0]  ;;  %v751_v57 = vor.u32 %v855_v49, %v750_v48  ;;  %v642_v58 = vld [vmem:[#allocation7 + $0x18] sm:$0xf] }
  0x23   :  { %274 = vmatpush.bf16.msra.mxu1 %v695_v30  ;;  %286 = vmatpush.bf16.msra.mxu2 %v723_v50  ;;  %v828_v59 = vld [vmem:[#allocation7 + $0x20] sm:$0xf0]  ;;  %v738_v60 = vld [vmem:[#allocation8 + $0x18] sm:$0xf]  ;;  %v711_v61 = vor.u32 %v844_v56, %v710_v52  ;;  %v698_v63 = vld [vmem:[#allocation7 + $0x80] sm:$0xf]  ;;  %v659_v1 = vor.u32 %v830_v54, %v656_v55 }
  0x24   :  { %261 = vmatpush.bf16.msra.mxu0 %v679_v31  ;;  %v852_v62 = vld [vmem:[#allocation8 + $0x20] sm:$0xf0]  ;;  %v841_v0 = vld [vmem:[#allocation7 + $0x88] sm:$0xf0]  ;;  %v630_v2 = vld [vmem:[#allocation7] sm:$0xf]  ;;  %v643_v3 = vor.u32 %v828_v59, %v642_v58 }
  0x25   :  { %467 = vmatpush.bf16.msra.mxu3 %v775_v34  ;;  %v825_v4 = vld [vmem:[#allocation7 + $0x8] sm:$0xf0]  ;;  %v827_v5 = vld [vmem:[#allocation7 + $0x1c] sm:$0xf]  ;;  %v644_v6 = vld [vmem:[#allocation7 + $0x24] sm:$0xf0]  ;;  %v699_v7 = vor.u32 %v841_v0, %v698_v63  ;;  %v739_v8 = vor.u32 %v852_v62, %v738_v60 }
  0x26   :  { %v726_v9 = vld [vmem:[#allocation8] sm:$0xf]  ;;  %v686_v10 = vld [vmem:[#allocation7 + $0x68] sm:$0xf]  ;;  %v838_v11 = vld [vmem:[#allocation7 + $0x70] sm:$0xf0]  ;;  %v647_v15 = vor.u32 %v827_v5, %v644_v6  ;;  %v631_v19 = vor.u32 %v825_v4, %v630_v2 }
  0x27   :  { %275 = vmatpush.bf16.msra.mxu1 %v683_v39  ;;  %287 = vmatpush.bf16.msra.mxu2 %v711_v61  ;;  %v849_v12 = vld [vmem:[#allocation8 + $0x8] sm:$0xf0]  ;;  %v812_v14 = vld [vmem:[#allocation8 + $0xb4] sm:$0xf0]  ;;  %v1092_v16 = vld [vmem:[#allocation5] sm:$0xff]  ;;  %v687_v23 = vor.u32 %v838_v11, %v686_v10  ;;  %s613_s23 = sshll.u32 %s1133_s6, 4  ;;  %s614_s23 = int_to_ptr.hbm [resolvable:$true] %s613_s23 }
  0x28   :  { %262 = vmatpush.bf16.msra.mxu0 %v667_v40  ;;  %v869_v13 = vld [vmem:[#allocation8 + $0xac] sm:$0xf]  ;;  %v1094_v17 = vld [vmem:[#allocation5 + $0x8] sm:$0xff]  ;;  %v824_v18 = vld [vmem:[#allocation7 + $0x4] sm:$0xf]  ;;  %v727_v24 = vor.u32 %v849_v12, %v726_v9 }
  0x29   :  { %468 = vmatpush.bf16.msra.mxu3 %v763_v44  ;;  %v632_v20 = vld [vmem:[#allocation7 + $0xc] sm:$0xf0]  ;;  %v87_v21 = vld [vmem:[#allocation2] sm:$0xff]  ;;  %v88_v22 = vld [vmem:[#allocation2 + $0x8] sm:$0xff]  ;;  %v815_v25 = vor.u32 %v869_v13, %v812_v14  ;;  %v1100_v34 = vpack.c.bf16 %v1094_v17, %v1092_v16 }
  0x2a   :  { %v866_v26 = vld [vmem:[#allocation8 + $0x94] sm:$0xf]  ;;  %v818_v27 = vld [vmem:[#allocation8 + $0xb0] sm:$0xf]  ;;  %v871_v28 = vld [vmem:[#allocation8 + $0xb8] sm:$0xf0]  ;;  %v635_v32 = vor.u32 %v824_v18, %v632_v20  ;;  %v1096_v33 = vpack.c.bf16 %v88_v22, %v87_v21 }
  0x2b   :  { %276 = vmatpush.bf16.msra.mxu1 %v671_v51  ;;  %288 = vmatpush.bf16.msra.mxu2 %v699_v7  ;;  %v800_v29 = vld [vmem:[#allocation8 + $0x9c] sm:$0xf0]  ;;  %v674_v30 = vld [vmem:[#allocation7 + $0x50] sm:$0xf]  ;;  %v835_v31 = vld [vmem:[#allocation7 + $0x58] sm:$0xf0]  ;;  %v819_v35 = vor.u32 %v871_v28, %v818_v27 }
  0x2c   :  { %263 = vmatpush.bf16.msra.mxu0 %v655_v53  ;;  %v863_v36 = vld [vmem:[#allocation8 + $0x7c] sm:$0xf]  ;;  %v803_v37 = vor.u32 %v866_v26, %v800_v29  ;;  %v788_v38 = vld [vmem:[#allocation8 + $0x84] sm:$0xf0]  ;;  %v806_v39 = vld [vmem:[#allocation8 + $0x98] sm:$0xf]  ;;  %v675_v41 = vor.u32 %v835_v31, %v674_v30 }
  0x2d   :  { %469 = vmatpush.bf16.msra.mxu3 %v751_v57  ;;  %v868_v40 = vld [vmem:[#allocation8 + $0xa0] sm:$0xf0]  ;;  %v662_v42 = vld [vmem:[#allocation7 + $0x38] sm:$0xf]  ;;  %v791_v45 = vor.u32 %v863_v36, %v788_v38  ;;  %v794_v47 = vld [vmem:[#allocation8 + $0x80] sm:$0xf] }
  0x2e   :  { %v832_v43 = vld [vmem:[#allocation7 + $0x40] sm:$0xf0]  ;;  %v807_v44 = vor.u32 %v868_v40, %v806_v39  ;;  %v865_v48 = vld [vmem:[#allocation8 + $0x88] sm:$0xf0]  ;;  %v776_v50 = vld [vmem:[#allocation8 + $0x6c] sm:$0xf0] }
  0x2f   :  { %277 = vmatpush.bf16.msra.mxu1 %v659_v1  ;;  %289 = vmatpush.bf16.msra.mxu2 %v687_v23  ;;  %v860_v46 = vld [vmem:[#allocation8 + $0x64] sm:$0xf]  ;;  %v663_v49 = vor.u32 %v832_v43, %v662_v42  ;;  %v650_v51 = vld [vmem:[#allocation7 + $0x20] sm:$0xf]  ;;  %v829_v52 = vld [vmem:[#allocation7 + $0x28] sm:$0xf0]  ;;  %v795_v53 = vor.u32 %v865_v48, %v794_v47 }
  0x30   :  { %264 = vmatpush.bf16.msra.mxu0 %v643_v3  ;;  %v779_v54 = vor.u32 %v860_v46, %v776_v50  ;;  %v857_v55 = vld [vmem:[#allocation8 + $0x4c] sm:$0xf]  ;;  %v782_v56 = vld [vmem:[#allocation8 + $0x68] sm:$0xf]  ;;  %v862_v57 = vld [vmem:[#allocation8 + $0x70] sm:$0xf0]  ;;  %v651_v58 = vor.u32 %v829_v52, %v650_v51 }
  0x31   :  { %470 = vmatpush.bf16.msra.mxu3 %v739_v8  ;;  %v764_v59 = vld [vmem:[#allocation8 + $0x54] sm:$0xf0]  ;;  %v638_v60 = vld [vmem:[#allocation7 + $0x8] sm:$0xf]  ;;  %v826_v61 = vld [vmem:[#allocation7 + $0x10] sm:$0xf0]  ;;  %v783_v62 = vor.u32 %v862_v57, %v782_v56 }
  0x32   :  { %v767_v63 = vor.u32 %v857_v55, %v764_v59  ;;  %v770_v0 = vld [vmem:[#allocation8 + $0x50] sm:$0xf]  ;;  %v859_v1 = vld [vmem:[#allocation8 + $0x58] sm:$0xf0]  ;;  %v639_v2 = vor.u32 %v826_v61, %v638_v60  ;;  %v854_v3 = vld [vmem:[#allocation8 + $0x34] sm:$0xf] }
  0x33   :  { %278 = vmatpush.bf16.msra.mxu1 %v647_v15  ;;  %290 = vmatpush.bf16.msra.mxu2 %v675_v41  ;;  %v752_v4 = vld [vmem:[#allocation8 + $0x3c] sm:$0xf0]  ;;  %v771_v5 = vor.u32 %v859_v1, %v770_v0  ;;  %v758_v7 = vld [vmem:[#allocation8 + $0x38] sm:$0xf]  ;;  %v856_v8 = vld [vmem:[#allocation8 + $0x40] sm:$0xf0] }
  0x34   :  { %265 = vmatpush.bf16.msra.mxu0 %v631_v19  ;;  %v755_v6 = vor.u32 %v854_v3, %v752_v4  ;;  %v851_v9 = vld [vmem:[#allocation8 + $0x1c] sm:$0xf]  ;;  %v740_v10 = vld [vmem:[#allocation8 + $0x24] sm:$0xf0]  ;;  %v759_v11 = vor.u32 %v856_v8, %v758_v7  ;;  %v746_v13 = vld [vmem:[#allocation8 + $0x20] sm:$0xf] }
  0x35   :  { %471 = vmatpush.bf16.msra.mxu3 %v727_v24  ;;  %v743_v12 = vor.u32 %v851_v9, %v740_v10  ;;  %v853_v14 = vld [vmem:[#allocation8 + $0x28] sm:$0xf0]  ;;  %v848_v15 = vld [vmem:[#allocation8 + $0x4] sm:$0xf]  ;;  %v728_v18 = vld [vmem:[#allocation8 + $0xc] sm:$0xf0] }
  0x36   :  { %v747_v19 = vor.u32 %v853_v14, %v746_v13  ;;  %v731_v20 = vor.u32 %v848_v15, %v728_v18  ;;  %v734_v21 = vld [vmem:[#allocation8 + $0x8] sm:$0xf]  ;;  %v850_v22 = vld [vmem:[#allocation8 + $0x10] sm:$0xf0]  ;;  %v1111_v24 = vld [vmem:[%s1131_s4] sm:$0x7] }
  0x37   :  { %279 = vmatpush.bf16.msra.mxu1 %v635_v32  ;;  %266 = vmatmul.bf16.vlgmr.msra.gmra.mxu0 %v1096_v33  ;;  %v735_v23 = vor.u32 %v850_v22, %v734_v21  ;;  %v125_v39 = vperm.slane %v1111_v24, 1  ;;  %v881_v59 = vld [vmem:[%s1132_s5] ss:$0 sm:$0xff]  ;;  %v126_v3 = vperm.slane %v1111_v24, 2  ;;  %s1038_s5 = smov [#allocation10]  }
  0x38   :  { %478 = vmatpush.bf16.msrb.mxu0 %v815_v25  ;;  %472 = vmatmul.bf16.vlgmr.msra.gmra.mxu3 %v1100_v34  ;;  %v124_v25 = vperm.slane %v1111_v24, 0  ;;  %s611_s20 = sshll.u32 %s1038_s5, 4  ;;  %s612_s20 = int_to_ptr.vmem [resolvable:$true] %s611_s20 }
  0x39   :  { %291 = vmatpush.bf16.msra.mxu2 %v663_v49 }
  0x3a   :  { %280 = vmatmul.bf16.vlgmr.msra.gmra.mxu1 %v1096_v33 }
  0x3b   :  { %492 = vmatpush.bf16.msrb.mxu1 %v819_v35 }
  0x3c   :  { %479 = vmatpush.bf16.msrb.mxu0 %v803_v37 }
  0x3d   :  { %292 = vmatpush.bf16.msra.mxu2 %v651_v58 }
  0x3f   :  { %493 = vmatpush.bf16.msrb.mxu1 %v807_v44 }
  0x40   :  { %480 = vmatpush.bf16.msrb.mxu0 %v791_v45 }
  0x41   :  { %293 = vmatpush.bf16.msra.mxu2 %v639_v2 }
  0x43   :  { %494 = vmatpush.bf16.msrb.mxu1 %v795_v53 }
  0x44   :  { %481 = vmatpush.bf16.msrb.mxu0 %v779_v54  ;;  %294 = vmatmul.bf16.vlgmr.msra.gmra.mxu2 %v1096_v33 }
  0x47   :  { %495 = vmatpush.bf16.msrb.mxu1 %v783_v62 }
  0x48   :  { %482 = vmatpush.bf16.msrb.mxu0 %v767_v63 }
  0x4b   :  { %496 = vmatpush.bf16.msrb.mxu1 %v771_v5 }
  0x4c   :  { %483 = vmatpush.bf16.msrb.mxu0 %v755_v6 }
  0x4f   :  { %497 = vmatpush.bf16.msrb.mxu1 %v759_v11 }
  0x50   :  { %484 = vmatpush.bf16.msrb.mxu0 %v743_v12 }
  0x53   :  { %498 = vmatpush.bf16.msrb.mxu1 %v747_v19 }
  0x54   :  { %485 = vmatpush.bf16.msrb.mxu0 %v731_v20 }
  0x57   :  { %486 = vmatmul.bf16.vlgmr.msrb.gmra.mxu0 %v1100_v34  ;;  %499 = vmatpush.bf16.msrb.mxu1 %v735_v23 }
  0x5a   :  { %500 = vmatmul.bf16.vlgmr.msrb.gmra.mxu1 %v1100_v34 }
  0xb4   :  { %v267_v26 = vpop.f32.mrf.mxu0 }
  0xb5   :  { %v268_v27 = vadd.f32 %v267_v26, %v124_v25 }
  0xb7   :  { %v281_v38 = vpop.f32.mrf.mxu1 }
  0xb8   :  { %v282_v41 = vadd.f32 %v281_v38, %v125_v39 }
  0xbb   :  { %v473_v28 = vpop.f32.mrf.mxu3 }
  0xbc   :  { %v506_v29 = vadd.f32 %v473_v28, %v268_v27  ;;  %v269_v30 = vpop.f32.mrf.mxu0 }
  0xbd   :  { %v270_v32 = vadd.f32 %v269_v30, %v124_v25 }
  0xbe   :  { %v820_v31 = vmul.f32 -1.442695, %v506_v29 }
  0xbf   :  { %v283_v46 = vpop.f32.mrf.mxu1 }
  0xc0   :  { %882 = vpow2.f32 %v820_v31  ;;  %v284_v52 = vadd.f32 %v283_v46, %v125_v39 }
  0xc3   :  { %v475_v33 = vpop.f32.mrf.mxu3 }
  0xc4   :  { %v507_v35 = vadd.f32 %v475_v33, %v270_v32 }
  0xc6   :  { %v883_v36 = vpop.eup %882  ;;  %v821_v37 = vmul.f32 -1.442695, %v507_v35 }
  0xc7   :  { %v514_v34 = vadd.f32 1.0, %v883_v36  ;;  %v295_v7 = vpop.f32.mrf.mxu2 }
  0xc8   :  { %884 = vpow2.f32 %v821_v37  ;;  %v296_v9 = vadd.f32 %v295_v7, %v126_v3 }
  0xc9   :  { %886 = vrcp.f32 %v514_v34  ;;  %vm521_vm0 = vweird.f32 %v514_v34  ;;  %v527_v56 = vand.u32 2147483648, %v514_v34  ;;  %v525_v58 = vand.u32 2147483647, %v514_v34 }
  0xcb   :  { %v528_v2 = vor.u32 1.1754944e-38, %v527_v56  ;;  %vm526_vm3 = vcmp.eq.f32.partialorder %v525_v58, 8.507059e+37 }
  0xce   :  { %v885_v40 = vpop.eup %884 }
  0xcf   :  { %v887_v42 = vpop.eup %886  ;;  %v515_v43 = vadd.f32 1.0, %v885_v40  ;;  %v297_v28 = vpop.f32.mrf.mxu2 }
  0xd0   :  { %v517_v44 = vmul.f32 %v887_v42, %v514_v34  ;;  %vm522_vm1 = vweird.f32 %v887_v42  ;;  %v298_v32 = vadd.f32 %v297_v28, %v126_v3 }
  0xd1   :  { %888 = vrcp.f32 %v515_v43  ;;  %vm523_vm2 = vmor %vm521_vm0, %vm522_vm1  ;;  %v542_v11 = vand.u32 2147483648, %v515_v43  ;;  %vm536_vm5 = vweird.f32 %v515_v43  ;;  %v540_v13 = vand.u32 2147483647, %v515_v43 }
  0xd2   :  { %v518_v48 = vsub.f32 1.0, %v517_v44 }
  0xd3   :  { %v543_v23 = vor.u32 1.1754944e-38, %v542_v11  ;;  %vm541_vm7 = vcmp.eq.f32.partialorder %v540_v13, 8.507059e+37 }
  0xd4   :  { %v487_v45 = vpop.f32.mrf.mxu0  ;;  %v519_v50 = vmul.f32 %v887_v42, %v518_v48 }
  0xd5   :  { %v546_v47 = vadd.f32 %v487_v45, %v282_v41 }
  0xd6   :  { %v520_v54 = vadd.f32 %v887_v42, %v519_v50 }
  0xd7   :  { %v822_v49 = vmul.f32 -1.442695, %v546_v47  ;;  %v889_v51 = vpop.eup %888  ;;  %v501_v62 = vpop.f32.mrf.mxu1 }
  0xd8   :  { %v532_v53 = vmul.f32 %v889_v51, %v515_v43  ;;  %v524_v1 = vsel %vm523_vm2, %v887_v42, %v520_v54  ;;  %v589_v4 = vadd.f32 %v881_v59, %v501_v62  ;;  %vm537_vm4 = vweird.f32 %v889_v51 }
  0xd9   :  { %890 = vpow2.f32 %v822_v49  ;;  %v529_v6 = vsel %vm526_vm3, %v528_v2, %v524_v1  ;;  %vm538_vm6 = vmor %vm536_vm5, %vm537_vm4 }
  0xda   :  { %v533_v60 = vsub.f32 1.0, %v532_v53  ;;  %v591_v8 = vmul.f32 %v589_v4, %v529_v6 }
  0xdc   :  { %v489_v55 = vpop.f32.mrf.mxu0  ;;  %v534_v5 = vmul.f32 %v889_v51, %v533_v60  ;;  %v593_v19 = vadd.f32 %v591_v8, %v296_v9 }
  0xdd   :  { %v547_v57 = vadd.f32 %v489_v55, %v284_v52 }
  0xde   :  { %v535_v10 = vadd.f32 %v889_v51, %v534_v5 }
  0xdf   :  { %v891_v61 = vpop.eup %890  ;;  %v823_v63 = vmul.f32 -1.442695, %v547_v57  ;;  %v503_v18 = vpop.f32.mrf.mxu1 }
  0xe0   :  { %v554_v0 = vadd.f32 1.0, %v891_v61  ;;  %v539_v21 = vsel %vm538_vm6, %v889_v51, %v535_v10  ;;  %v590_v24 = vadd.f32 %v881_v59, %v503_v18 }
  0xe1   :  { %v544_v27 = vsel %vm541_vm7, %v543_v23, %v539_v21 }
  0xe2   :  { %892 = vrcp.f32 %v554_v0  ;;  %v567_v25 = vand.u32 2147483648, %v554_v0  ;;  %v565_v29 = vand.u32 2147483647, %v554_v0  ;;  %vm561_vm9 = vweird.f32 %v554_v0 }
  0xe3   :  { %894 = vpow2.f32 %v823_v63  ;;  %v592_v31 = vmul.f32 %v590_v24, %v544_v27 }
  0xe4   :  { %v568_v33 = vor.u32 1.1754944e-38, %v567_v25  ;;  %vm566_vm11 = vcmp.eq.f32.partialorder %v565_v29, 8.507059e+37 }
  0xe5   :  { %v594_v40 = vadd.f32 %v592_v31, %v298_v32 }
  0xe8   :  { %v893_v12 = vpop.eup %892 }
  0xe9   :  { %v895_v14 = vpop.eup %894  ;;  %v557_v15 = vmul.f32 %v893_v12, %v554_v0  ;;  %vm562_vm8 = vweird.f32 %v893_v12 }
  0xea   :  { %v555_v20 = vadd.f32 1.0, %v895_v14  ;;  %vm563_vm10 = vmor %vm561_vm9, %vm562_vm8 }
  0xeb   :  { %v558_v22 = vsub.f32 1.0, %v557_v15 }
  0xec   :  { %896 = vrcp.f32 %v555_v20  ;;  %v582_v44 = vand.u32 2147483648, %v555_v20  ;;  %v580_v46 = vand.u32 2147483647, %v555_v20  ;;  %vm576_vm13 = vweird.f32 %v555_v20 }
  0xed   :  { %v559_v26 = vmul.f32 %v893_v12, %v558_v22  ;;  %898 = vtanh.f32 %v593_v19 }
  0xee   :  { %900 = vtanh.f32 %v594_v40  ;;  %v583_v49 = vor.u32 1.1754944e-38, %v582_v44  ;;  %vm581_vm15 = vcmp.eq.f32.partialorder %v580_v46, 8.507059e+37 }
  0xef   :  { %v560_v30 = vadd.f32 %v893_v12, %v559_v26 }
  0xf1   :  { %v564_v35 = vsel %vm563_vm10, %v893_v12, %v560_v30 }
  0xf2   :  { %v897_v36 = vpop.eup %896  ;;  %v569_v37 = vsel %vm566_vm11, %v568_v33, %v564_v35 }
  0xf3   :  { %v572_v34 = vmul.f32 %v897_v36, %v555_v20  ;;  %v597_v38 = vsub.f32 1.0, %v569_v37  ;;  %v899_v39 = vpop.eup %898  ;;  %v601_v43 = vmul.f32 %v569_v37, %v1092_v16  ;;  %vm577_vm12 = vweird.f32 %v897_v36 }
  0xf4   :  { %vm578_vm14 = vmor %vm576_vm13, %vm577_vm12  ;;  %v901_v53 = vpop.eup %900 }
  0xf5   :  { %v573_v41 = vsub.f32 1.0, %v572_v34  ;;  %v599_v42 = vmul.f32 %v899_v39, %v597_v38 }
  0xf7   :  { %v574_v45 = vmul.f32 %v897_v36, %v573_v41  ;;  %v603_v47 = vadd.f32 %v601_v43, %v599_v42 }
  0xf9   :  { %v575_v48 = vadd.f32 %v897_v36, %v574_v45  ;;  %605 = vst [vmem:[#allocation10] sm:$0xff] %v603_v47 }
  0xfb   :  { %v579_v50 = vsel %vm578_vm14, %v897_v36, %v575_v48 }
  0xfc   :  { %v584_v51 = vsel %vm581_vm15, %v583_v49, %v579_v50 }
  0xfd   :  { %v598_v52 = vsub.f32 1.0, %v584_v51  ;;  %v602_v54 = vmul.f32 %v584_v51, %v1094_v17 }
  0xff   :  { %v600_v16 = vmul.f32 %v901_v53, %v598_v52 }
 0x101   :  { %v604_v55 = vadd.f32 %v602_v54, %v600_v16 }
 0x103   :  { %606 = vst [vmem:[#allocation10 + $0x8] sm:$0xff] %v604_v55 }
 0x104   :  { %619 = dma.vmem_to_hbm [thread:$0]  %s612_s20, 256, %s614_s23, [#allocation4], %s1031_s29, %s1031_s29, %s1032_s30  }
 0x105   :  { %1028 = dma.done.wait [#allocation4], 256  }
 0x106   :  { %1029 = vsyncadd [#allocation4], 4294967040 }
 0x107   :  { %624 = vsyncpa [#allocation3], 1 }
 0x108   :  { %625 = vsyncpa [#allocation6], 1 }
 0x109   :  { %626 = vsyncpa [#allocation9], 1 }
 0x10a   :  { %627 = vsyncpa [#allocation4], 1 }

</bundles_post_ra>
